<compile_context>
chip_gen: v7x
topology: tpu7x:2x2x1
jax: 0.10.0
libtpu: 0.0.40
codegen_flags: <defaults>
</compile_context>

<pallas_src>
import functools

import jax
import jax.numpy as jnp
from jax import lax
from jax.experimental import pallas as pl
from jax.experimental.pallas import tpu as pltpu


def _mlp_kernel(x_ref, w1_ref, b1_ref, w2_ref, b2_ref, w3_ref, b3_ref, o_ref,
                *, lane_chunk):
    """3-layer per-pixel MLP on a (tile_b, c_in, tile_p) channel-major block."""
    w1 = w1_ref[...]
    w2 = w2_ref[...]
    w3 = w3_ref[...]
    b1 = b1_ref[...]          # (h1, 1) f32 — broadcasts along the lane axis
    b2 = b2_ref[...]
    b3 = b3_ref[...]
    mm_dtype = w1.dtype       # bf16 (default) or f32 matmul operands

    tile_b, _, tile_p = x_ref.shape
    chunk = lane_chunk
    n_chunks = tile_p // chunk          # lane_chunk always divides tile_p

    def body(i, carry):
        # Flat loop index -> (batch row, lane chunk); avoid div/mod when trivial.
        if tile_b == 1:
            b, c = 0, i
        elif n_chunks == 1:
            b, c = i, 0
        else:
            b, c = i // n_chunks, i % n_chunks
        if n_chunks == 1:
            p0 = 0
        else:
            p0 = pl.multiple_of(c * chunk, 128)

        # Fused layer1 -> relu -> layer2 -> relu -> layer3 on one lane chunk;
        # hidden activations never leave vregs.
        x = x_ref[b, :, pl.ds(p0, chunk)].astype(mm_dtype)
        h1 = jnp.dot(w1, x, preferred_element_type=jnp.float32) + b1
        h1 = jnp.maximum(h1, 0.0).astype(mm_dtype)
        h2 = jnp.dot(w2, h1, preferred_element_type=jnp.float32) + b2
        h2 = jnp.maximum(h2, 0.0).astype(mm_dtype)
        y = jnp.dot(w3, h2, preferred_element_type=jnp.float32) + b3
        o_ref[b, :, pl.ds(p0, chunk)] = y.astype(o_ref.dtype)
        return carry

    total = tile_b * n_chunks
    lax.fori_loop(0, total, body, 0, unroll=(total <= 16))


def _choose_tiling(n, hw, max_tile_p):
    """Pick (tile_b, tile_p, num_b, num_p): ~max_tile_p pixels of work per step."""
    # Lane tile must be a multiple of 128 or the full spatial extent.
    max_tile_p = max(128, (max_tile_p // 128) * 128)
    if hw <= max_tile_p:
        tile_p = hw                                    # full extent: always legal
    else:
        tile_p = max_tile_p                            # fallback: masked tail block
        for lanes in range(max_tile_p // 128, 0, -1):  # prefer an exact divisor
            if hw % (lanes * 128) == 0:
                tile_p = lanes * 128
                break
    num_p = -(-hw // tile_p)

    # Batch block: amortize the fixed per-grid-step cost when the image is small.
    desired_b = max(1, max_tile_p // tile_p)
    tile_b = 1
    for d in range(min(desired_b, n), 0, -1):
        if n % d == 0:
            tile_b = d
            break
    num_b = n // tile_b

    # Guarantee >=2 grid points so megacore (v7x: 2 TCs) has work to split.
    if num_b * num_p < 2:
        if n >= 2:
            for d in range(n // 2, 0, -1):
                if n % d == 0:
                    tile_b = d
                    break
            num_b = n // tile_b
        elif tile_p % 256 == 0:
            tile_p //= 2
            num_p = -(-hw // tile_p)
    return tile_b, tile_p, num_b, num_p


def _choose_lane_chunk(tile_p, lane_chunk):
    """Largest multiple of 128 <= lane_chunk that divides tile_p, else tile_p."""
    cand = (min(lane_chunk, tile_p) // 128) * 128
    while cand >= 128:
        if tile_p % cand == 0:
            return cand
        cand -= 128
    return tile_p


def meta_post_processing(x_nchw, params, *, max_tile_p=16384, lane_chunk=512,
                         use_bf16_matmul=True):
    """x_nchw: (N, C_in, H, W) -> (N, C_out, H, W), matching the PyTorch module."""
    w1, b1, w2, b2, w3, b3 = params
    n, c_in, h, w = x_nchw.shape
    c_out = w3.shape[0]
    hw = h * w

    # Free reshape: channels stay where they are, pixels become the lane axis.
    x3 = x_nchw.reshape(n, c_in, hw)

    tile_b, tile_p, num_b, num_p = _choose_tiling(n, hw, max_tile_p)
    chunk = _choose_lane_chunk(tile_p, lane_chunk)
    grid = (num_b, num_p)

    mm_dtype = jnp.bfloat16 if use_bf16_matmul else jnp.float32
    w1m = w1.astype(mm_dtype)
    w2m = w2.astype(mm_dtype)
    w3m = w3.astype(mm_dtype)
    # Biases as (out, 1) f32 so they broadcast along the lane (pixel) axis.
    b1c = b1.reshape(-1, 1).astype(jnp.float32)
    b2c = b2.reshape(-1, 1).astype(jnp.float32)
    b3c = b3.reshape(-1, 1).astype(jnp.float32)

    const = lambda bb, pp: (0, 0)

    # VMEM budget: double-buffered x/out blocks plus tiny weights + headroom.
    # Stay under v7x's 64 MiB physical VMEM; raise above v5e's 16 MiB scoped
    # default when large tiles are requested.
    io_block_bytes = tile_b * tile_p * (c_in + c_out) * x_nchw.dtype.itemsize
    vmem_limit = int(min(64 << 20, max(16 << 20, 3 * io_block_bytes + (2 << 20))))

    kernel = functools.partial(_mlp_kernel, lane_chunk=chunk)

    out3 = pl.pallas_call(
        kernel,
        out_shape=jax.ShapeDtypeStruct((n, c_out, hw), x_nchw.dtype),
        grid_spec=pltpu.PrefetchScalarGridSpec(
            num_scalar_prefetch=0,
            grid=grid,
            in_specs=[
                pl.BlockSpec((tile_b, c_in, tile_p), lambda bb, pp: (bb, 0, pp)),
                pl.BlockSpec(w1m.shape, const),
                pl.BlockSpec(b1c.shape, const),
                pl.BlockSpec(w2m.shape, const),
                pl.BlockSpec(b2c.shape, const),
                pl.BlockSpec(w3m.shape, const),
                pl.BlockSpec(b3c.shape, const),
            ],
            out_specs=pl.BlockSpec((tile_b, c_out, tile_p),
                                   lambda bb, pp: (bb, 0, pp)),
        ),
        compiler_params=pltpu.CompilerParams(
            # Both grid axes are independent per-pixel work -> megacore split.
            dimension_semantics=("parallel", "parallel"),
            vmem_limit_bytes=vmem_limit,
        ),
    )(x3, w1m, b1c, w2m, b2c, w3m, b3c)

    # Free reshape back to NCHW — output already channel-major.
    return out3.reshape(n, c_out, h, w)


def init_params(key, in_channels, out_channels, hidden1=32, hidden2=32):
    """Deterministic init. Weights stored in PyTorch Linear (out, in) layout."""
    k1, k2, k3, k4, k5, k6 = jax.random.split(key, 6)

    def uinit(k, shape, fan_in):
        bound = 1.0 / jnp.sqrt(fan_in)
        return jax.random.uniform(k, shape, jnp.float32, -bound, bound)

    w1 = uinit(k1, (hidden1, in_channels), in_channels)
    b1 = uinit(k2, (hidden1,), in_channels)
    w2 = uinit(k3, (hidden2, hidden1), hidden1)
    b2 = uinit(k4, (hidden2,), hidden1)
    w3 = uinit(k5, (out_channels, hidden2), hidden2)
    b3 = uinit(k6, (out_channels,), hidden2)
    return (w1, b1, w2, b2, w3, b3)


def reference_forward(x_nchw, params):
    """Pure-JAX reference mirroring the PyTorch forward semantics (f32)."""
    w1, b1, w2, b2, w3, b3 = params
    x = jnp.transpose(x_nchw, (0, 2, 3, 1))           # NCHW -> NHWC
    h = jnp.maximum(x @ w1.T + b1, 0.0)
    h = jnp.maximum(h @ w2.T + b2, 0.0)
    y = h @ w3.T + b3
    return jnp.transpose(y, (0, 3, 1, 2))              # NHWC -> NCHW


if __name__ == "__main__":
    key = jax.random.PRNGKey(0)
    k_x, k_p, k_x2, k_x3 = jax.random.split(key, 4)

    N, C_IN, H, W = 2, 4, 16, 16
    C_OUT = 3

    params = init_params(k_p, C_IN, C_OUT)

    # Primary small case (module's nominal usage).
    x = jax.random.normal(k_x, (N, C_IN, H, W), dtype=jnp.float32)
    ref = reference_forward(x, params)

    out_f32 = jax.block_until_ready(
        meta_post_processing(x, params, use_bf16_matmul=False))
    assert out_f32.shape == (N, C_OUT, H, W), out_f32.shape
    assert jnp.allclose(out_f32, ref, atol=1e-4, rtol=1e-4), "f32 path mismatch"

    out_bf16 = jax.block_until_ready(meta_post_processing(x, params))
    assert out_bf16.shape == (N, C_OUT, H, W), out_bf16.shape
    assert jnp.allclose(out_bf16, ref, atol=5e-2, rtol=5e-2), "bf16 path mismatch"

    # Exercise the lane-chunked + megacore-split path (n=1, larger image).
    x2 = jax.random.normal(k_x2, (1, C_IN, 64, 64), dtype=jnp.float32)
    out2 = jax.block_until_ready(meta_post_processing(x2, params))
    ref2 = reference_forward(x2, params)
    assert jnp.allclose(out2, ref2, atol=5e-2, rtol=5e-2), "chunked path mismatch"

    # Exercise the batch-block (tile_b > 1, dynamic batch index) path.
    x3 = jax.random.normal(k_x3, (4, C_IN, H, W), dtype=jnp.float32)
    out3 = jax.block_until_ready(meta_post_processing(x3, params))
    ref3 = reference_forward(x3, params)
    assert jnp.allclose(out3, ref3, atol=5e-2, rtol=5e-2), "batch-block path mismatch"

    print("KERNEL_OK")
</pallas_src>

<mosaic_0001>
module attributes {stable_mosaic.version = 11 : i64} {
  func.func @_mlp_kernel(%arg0: i32, %arg1: i32, %arg2: memref<1x4x256xf32, #tpu.memory_space<vmem>>, %arg3: memref<32x4xf32, #tpu.memory_space<vmem>>, %arg4: memref<32x1xf32, #tpu.memory_space<vmem>>, %arg5: memref<32x32xf32, #tpu.memory_space<vmem>>, %arg6: memref<32x1xf32, #tpu.memory_space<vmem>>, %arg7: memref<3x32xf32, #tpu.memory_space<vmem>>, %arg8: memref<3x1xf32, #tpu.memory_space<vmem>>, %arg9: memref<1x3x256xf32, #tpu.memory_space<vmem>>) attributes {dimension_semantics = [#tpu.dimension_semantics<parallel>, #tpu.dimension_semantics<parallel>], iteration_bounds = array<i64: 2, 1>, scalar_prefetch = 0 : i64, scratch_operands = 0 : i64, tpu.core_type = #tpu.core_type<tc>, window_params = [{transform_indices = @transform_0, window_bounds = array<i64: 1, 4, 256>}, {pipeline_mode = #tpu.pipeline_mode<synchronous>, transform_indices = @transform_1, window_bounds = array<i64: 32, 4>}, {pipeline_mode = #tpu.pipeline_mode<synchronous>, transform_indices = @transform_2, window_bounds = array<i64: 32, 1>}, {pipeline_mode = #tpu.pipeline_mode<synchronous>, transform_indices = @transform_3, window_bounds = array<i64: 32, 32>}, {pipeline_mode = #tpu.pipeline_mode<synchronous>, transform_indices = @transform_4, window_bounds = array<i64: 32, 1>}, {pipeline_mode = #tpu.pipeline_mode<synchronous>, transform_indices = @transform_5, window_bounds = array<i64: 3, 32>}, {pipeline_mode = #tpu.pipeline_mode<synchronous>, transform_indices = @transform_6, window_bounds = array<i64: 3, 1>}, {transform_indices = @transform_7, window_bounds = array<i64: 1, 3, 256>}]} {
    %c0 = arith.constant 0 : index
    %c0_0 = arith.constant 0 : index
    %0 = vector.load %arg3[%c0, %c0_0] : memref<32x4xf32, #tpu.memory_space<vmem>>, vector<32x4xf32>
    %c0_1 = arith.constant 0 : index
    %c0_2 = arith.constant 0 : index
    %1 = vector.load %arg5[%c0_1, %c0_2] : memref<32x32xf32, #tpu.memory_space<vmem>>, vector<32x32xf32>
    %c0_3 = arith.constant 0 : index
    %c0_4 = arith.constant 0 : index
    %2 = vector.load %arg7[%c0_3, %c0_4] : memref<3x32xf32, #tpu.memory_space<vmem>>, vector<3x32xf32>
    %c0_5 = arith.constant 0 : index
    %c0_6 = arith.constant 0 : index
    %3 = vector.load %arg4[%c0_5, %c0_6] : memref<32x1xf32, #tpu.memory_space<vmem>>, vector<32x1xf32>
    %c0_7 = arith.constant 0 : index
    %c0_8 = arith.constant 0 : index
    %4 = vector.load %arg6[%c0_7, %c0_8] : memref<32x1xf32, #tpu.memory_space<vmem>>, vector<32x1xf32>
    %c0_9 = arith.constant 0 : index
    %c0_10 = arith.constant 0 : index
    %5 = vector.load %arg8[%c0_9, %c0_10] : memref<3x1xf32, #tpu.memory_space<vmem>>, vector<3x1xf32>
    %c0_i32 = arith.constant 0 : i32
    %c0_11 = arith.constant 0 : index
    %c0_12 = arith.constant 0 : index
    %c0_13 = arith.constant 0 : index
    %6 = vector.load %arg2[%c0_11, %c0_12, %c0_13] : memref<1x4x256xf32, #tpu.memory_space<vmem>>, vector<1x4x256xf32>
    %7 = vector.shape_cast %6 : vector<1x4x256xf32> to vector<4x256xf32>
    %cst = arith.constant dense<0.000000e+00> : vector<32x256xf32>
    %8 = tpu.matmul %0, %7, %cst {dimension_numbers = #tpu.dot_dimension_numbers<[1], [0], [0], [1], [0, 0, 1, 1], [], []>} : vector<32x4xf32>, vector<4x256xf32>, vector<32x256xf32> -> vector<32x256xf32>
    %9 = vector.broadcast %3 : vector<32x1xf32> to vector<32x256xf32>
    %10 = arith.addf %8, %9 : vector<32x256xf32>
    %cst_14 = arith.constant 0.000000e+00 : f32
    %11 = vector.broadcast %cst_14 : f32 to vector<32x256xf32>
    %12 = arith.maximumf %10, %11 : vector<32x256xf32>
    %cst_15 = arith.constant dense<0.000000e+00> : vector<32x256xf32>
    %13 = tpu.matmul %1, %12, %cst_15 {dimension_numbers = #tpu.dot_dimension_numbers<[1], [0], [0], [1], [0, 0, 1, 1], [], []>} : vector<32x32xf32>, vector<32x256xf32>, vector<32x256xf32> -> vector<32x256xf32>
    %14 = vector.broadcast %4 : vector<32x1xf32> to vector<32x256xf32>
    %15 = arith.addf %13, %14 : vector<32x256xf32>
    %cst_16 = arith.constant 0.000000e+00 : f32
    %16 = vector.broadcast %cst_16 : f32 to vector<32x256xf32>
    %17 = arith.maximumf %15, %16 : vector<32x256xf32>
    %cst_17 = arith.constant dense<0.000000e+00> : vector<3x256xf32>
    %18 = tpu.matmul %2, %17, %cst_17 {dimension_numbers = #tpu.dot_dimension_numbers<[1], [0], [0], [1], [0, 0, 1, 1], [], []>} : vector<3x32xf32>, vector<32x256xf32>, vector<3x256xf32> -> vector<3x256xf32>
    %19 = vector.broadcast %5 : vector<3x1xf32> to vector<3x256xf32>
    %20 = arith.addf %18, %19 : vector<3x256xf32>
    %c0_18 = arith.constant 0 : index
    %c0_19 = arith.constant 0 : index
    %c0_20 = arith.constant 0 : index
    %21 = vector.load %arg9[%c0_18, %c0_19, %c0_20] : memref<1x3x256xf32, #tpu.memory_space<vmem>>, vector<1x3x256xf32>
    %22 = vector.shape_cast %21 : vector<1x3x256xf32> to vector<3x256xf32>
    %23 = vector.shape_cast %20 : vector<3x256xf32> to vector<1x3x256xf32>
    tpu.vector_store %arg9[%c0_18, %c0_19, %c0_20], %23 {strides = array<i32>} : memref<1x3x256xf32, #tpu.memory_space<vmem>>, vector<1x3x256xf32>,
    return
  }
  func.func @transform_0(%arg0: i32, %arg1: i32) -> (i32, i32, i32) {
    %c0_i32 = arith.constant 0 : i32
    %c0_i32_0 = arith.constant 0 : i32
    return %arg0, %c0_i32, %arg1 : i32, i32, i32
  }
  func.func @transform_1(%arg0: i32, %arg1: i32) -> (i32, i32) {
    %c0_i32 = arith.constant 0 : i32
    %c0_i32_0 = arith.constant 0 : i32
    %c0_i32_1 = arith.constant 0 : i32
    return %c0_i32, %c0_i32_0 : i32, i32
  }
  func.func @transform_2(%arg0: i32, %arg1: i32) -> (i32, i32) {
    %c0_i32 = arith.constant 0 : i32
    %c0_i32_0 = arith.constant 0 : i32
    %c0_i32_1 = arith.constant 0 : i32
    return %c0_i32, %c0_i32_0 : i32, i32
  }
  func.func @transform_3(%arg0: i32, %arg1: i32) -> (i32, i32) {
    %c0_i32 = arith.constant 0 : i32
    %c0_i32_0 = arith.constant 0 : i32
    %c0_i32_1 = arith.constant 0 : i32
    return %c0_i32, %c0_i32_0 : i32, i32
  }
  func.func @transform_4(%arg0: i32, %arg1: i32) -> (i32, i32) {
    %c0_i32 = arith.constant 0 : i32
    %c0_i32_0 = arith.constant 0 : i32
    %c0_i32_1 = arith.constant 0 : i32
    return %c0_i32, %c0_i32_0 : i32, i32
  }
  func.func @transform_5(%arg0: i32, %arg1: i32) -> (i32, i32) {
    %c0_i32 = arith.constant 0 : i32
    %c0_i32_0 = arith.constant 0 : i32
    %c0_i32_1 = arith.constant 0 : i32
    return %c0_i32, %c0_i32_0 : i32, i32
  }
  func.func @transform_6(%arg0: i32, %arg1: i32) -> (i32, i32) {
    %c0_i32 = arith.constant 0 : i32
    %c0_i32_0 = arith.constant 0 : i32
    %c0_i32_1 = arith.constant 0 : i32
    return %c0_i32, %c0_i32_0 : i32, i32
  }
  func.func @transform_7(%arg0: i32, %arg1: i32) -> (i32, i32, i32) {
    %c0_i32 = arith.constant 0 : i32
    %c0_i32_0 = arith.constant 0 : i32
    return %arg0, %c0_i32, %arg1 : i32, i32, i32
  }
}

</mosaic_0001>

<bundles_post_ra>
// kernel: tpu_custom_call.1
= control target key start
LH: loop header
LB: loop body
LE: loop exit
PB: predicated region body
PF: predicated region fallthrough
CT: control target
= control target key end

     0   :  { %s910_s24 = smov 0   ;;  %s912_s25 = smov 0   ;;  %s1022_s0 = inlined_call_operand.vmem [shape: f32[2,4,256], index: 0, kind: input, shape index: {}]   ;;  %s1023_s1 = inlined_call_operand.vmem [shape: f32[32,4], index: 1, kind: input, shape index: {}]   ;;  %s1024_s2 = inlined_call_operand.vmem [shape: f32[32,1], index: 2, kind: input, shape index: {}]   ;;  %s1025_s3 = inlined_call_operand.vmem [shape: f32[32,32], index: 3, kind: input, shape index: {}]   ;;  %s1026_s4 = inlined_call_operand.vmem [shape: f32[32,1], index: 4, kind: input, shape index: {}]   ;;  %s1027_s5 = inlined_call_operand.vmem [shape: f32[3,32], index: 5, kind: input, shape index: {}]   ;;  %s1028_s6 = inlined_call_operand.vmem [shape: f32[3,1], index: 6, kind: input, shape index: {}]   ;;  %s1029_s7 = inlined_call_operand.vmem [shape: f32[2,3,256], index: 7, kind: output, shape index: {}]  }
   0x1   :  { %s914_s26 = smov 0  }
   0x2 LB: > { %s29_s27 = sadd.s32 1, %s862_s25  ;;  %p779_p0 = scmp.ge.s32.totalorder %s866_s26, 1  ;;  %s866_s26 = sphi %s914_s26, %s17_s26   ;;  %s862_s25 = sphi %s912_s25, %s1031_s25   ;;  %s858_s24 = sphi %s910_s24, %s1030_s24  }
   0x3   : > { %p31_p1 = scmp.ge.s32.totalorder %s29_s27, 2  ;;  %p258_p2 = scmp.lt.s32.totalorder %s866_s26, 3 }
   0x5   : > { %s1033_s27 = smov (%p31_p1, %s29_s27), 0  ;;  %p259_p3 = pnand %p779_p0, %p258_p2 }
   0x6   : > { %p299_p4 = scmp.lt.s32.totalorder (!%p259_p3), %s858_s24, 1  ;;  %v868_v0 = vmov (!%p259_p3), 0.0   ;;  %v327_v1 = vld [vmem:[%s1024_s2] sm:$0xff] (!%p259_p3)  ;;  %v869_v2 = vmov (!%p259_p3), 0   ;;  %v329_v3 = vld [vmem:[%s1024_s2 + $0x10] sm:$0xff] (!%p259_p3)  ;;  %v328_v4 = vld [vmem:[%s1024_s2 + $0x8] sm:$0xff] (!%p259_p3) }
   0x7   : > { %262 = sbr.rel (%p259_p3) target bundleno = 710 (0x2c6), region = 48  ;;  %441 = vmatprep.mubr.f32.mxu0 (!%p259_p3), %v868_v0  ;;  %571 = vmatprep.mubr.f32.mxu1 (!%p259_p3), %v868_v0  ;;  %v330_v5 = vld [vmem:[%s1024_s2 + $0x18] sm:$0xff] (!%p259_p3)  ;;  %vm372_vm0 = vcmask (!%p259_p3), 1043456   ;;  %v318_v8 = vld [vmem:[%s1023_s1] sm:$0xff] (!%p259_p3)  ;;  %vm359_vm1 = vcmask (!%p259_p3), 31744   ;;  %v332_v10 = vld [vmem:[%s1026_s4 + $0x8] sm:$0xff] (!%p259_p3) }
   0x8   : > { %841 = vset.pattern.permute.xlu0 (!%p259_p3), %v869_v2  ;;  %842 = vset.pattern.permute.xlu1 (!%p259_p3), %v869_v2  ;;  %v331_v9 = vld [vmem:[%s1026_s4] sm:$0xff] (!%p259_p3)  ;;  %v319_v11 = vld [vmem:[%s1023_s1 + $0x8] sm:$0xff] (!%p259_p3)  ;;  %v333_v12 = vld [vmem:[%s1026_s4 + $0x10] sm:$0xff] (!%p259_p3)  ;;  %vm494_vm2 = vcmask (!%p259_p3), 261120  }
   0x9   : > { %339 = vperm.xlu0 (!%p259_p3), %841, %v327_v1   ;;  %349 = vperm.xlu1 (!%p259_p3), %842, %v329_v3   ;;  %v334_v13 = vld [vmem:[%s1026_s4 + $0x18] sm:$0xff] (!%p259_p3)  ;;  %v320_v14 = vld [vmem:[%s1023_s1 + $0x10] sm:$0xff] (!%p259_p3)  ;;  %v335_v15 = vld [vmem:[%s1028_s6] sm:$0x7] (!%p259_p3) }
   0xa   : > { %v321_v16 = vld [vmem:[%s1023_s1 + $0x18] sm:$0xff] (!%p259_p3)  ;;  %v322_v49 = vld [vmem:[%s1025_s3] sm:$0xff] (!%p259_p3)  ;;  %v323_v50 = vld [vmem:[%s1025_s3 + $0x8] sm:$0xff] (!%p259_p3) }
   0xb   : > { %v324_v51 = vld [vmem:[%s1025_s3 + $0x10] sm:$0xff] (!%p259_p3)  ;;  %v325_v52 = vld [vmem:[%s1025_s3 + $0x18] sm:$0xff] (!%p259_p3) }
   0xd   : > { %344 = vperm.xlu0 (!%p259_p3), %841, %v328_v4   ;;  %354 = vperm.xlu1 (!%p259_p3), %842, %v330_v5  }
   0xe   : > { %s1035_s24 = smov (!%p299_p4, %s858_s24), 1 }
   0xf   : > { %s797_s9 = sshll.u32 %s1035_s24, 3 }
  0x10   : > { %s306_s16 = scalar_lea.vmem %s1022_s0, %s797_s9  ;;  %s316_s11 = scalar_lea.vmem %s1029_s7, %s797_s9 }
  0x11   : > { %v336_v6 = vld [vmem:[%s306_s16] sm:$0xff]  ;;  %476 = vperm.xlu0 %841, %v331_v9   ;;  %481 = vperm.xlu1 %842, %v332_v10  }
  0x12   : > { %v358_v7 = vcombine.high %v336_v6, %v336_v6 }
  0x14   : > { %784 = vmatprep.subr.msk.mxu0 %vm372_vm0, %v358_v7 }
  0x15   : > { %785 = vmatpush1.msk.msra.mxu0 %vm372_vm0, %v336_v6  ;;  %486 = vperm.xlu0 %841, %v333_v12  }
  0x16   : > { %786 = vmatmul.mubr.msk.f32.vlgmr.msra.gmra.mrb[0].mxu0 %vm359_vm1, %v318_v8  ;;  %491 = vperm.xlu1 %842, %v334_v13  }
  0x17   : > { %447 = vmatprep.mubr.f32.mxu0 %v868_v0 }
  0x19   : > { %606 = vperm.xlu0 %841, %v335_v15  }
  0x1a   : > { %787 = vmatmul.mubr.msk.f32.gmra.mrb[2].mxu0 %vm359_vm1, %v319_v11 }
  0x1b   : > { %453 = vmatprep.mubr.f32.mxu0 %v868_v0 }
  0x1e   : > { %788 = vmatmul.mubr.msk.f32.gmra.mrb[4].mxu0 %vm359_vm1, %v320_v14 }
  0x1f   : > { %459 = vmatprep.mubr.f32.mxu0 %v868_v0 }
  0x22   : > { %789 = vmatmul.mubr.msk.f32.gmra.mrb[6].mxu0 %vm359_vm1, %v321_v16 }
  0x23   : > { %676 = vmatprep.mubr.f32.mxu0 %v868_v0 }
  0x88   : > { %v340_v17 = vpop.permute.xlu0 %339  ;;  %v350_v26 = vpop.permute.xlu1 %349 }
  0x8c   : > { %v345_v21 = vpop.permute.xlu0 %344  ;;  %v355_v37 = vpop.permute.xlu1 %354 }
  0x90   : > { %v477_v55 = vpop.permute.xlu0 %476  ;;  %v482_v57 = vpop.permute.xlu1 %481 }
  0x94   : > { %v487_v6 = vpop.permute.xlu0 %486 }
  0x95   : > { %v492_v9 = vpop.permute.xlu1 %491 }
  0xe9   : > { %v443_v18 = vpop.f32.mrb[0].mxu0 }
  0xea   : > { %v445_v19 = vpop.f32.mrb[1].mxu0  ;;  %v444_v20 = vadd.f32 %v443_v18, %v340_v17 }
  0xeb   : > { %v446_v22 = vadd.f32 %v445_v19, %v340_v17 }
  0xec   : > { %v466_v28 = vmax.f32 %v444_v20, 0.0 }
  0xed   : > { %v449_v23 = vpop.f32.mrb[2].mxu0  ;;  %v467_v30 = vmax.f32 %v446_v22, 0.0  ;;  %v607_v22 = vpop.permute.xlu0 %606 }
  0xee   : > { %v450_v24 = vadd.f32 %v449_v23, %v345_v21  ;;  %v451_v25 = vpop.f32.mrb[3].mxu0 }
  0xef   : > { %v452_v27 = vadd.f32 %v451_v25, %v345_v21  ;;  %v326_v21 = vld [vmem:[%s1027_s5] sm:$0x7] }
  0xf0   : > { %v468_v29 = vmax.f32 %v450_v24, 0.0 }
  0xf1   : > { %v469_v31 = vmax.f32 %v452_v27, 0.0  ;;  %v455_v32 = vpop.f32.mrb[4].mxu0 }
  0xf2   : > { %v457_v33 = vpop.f32.mrb[5].mxu0  ;;  %v801_v34 = vpack.c.bf16 %v468_v29, %v466_v28  ;;  %v456_v36 = vadd.f32 %v455_v32, %v350_v26 }
  0xf3   : > { %v799_v35 = vpack.c.bf16 %v469_v31, %v467_v30  ;;  %v458_v38 = vadd.f32 %v457_v33, %v350_v26 }
  0xf4   : > { %v470_v43 = vmax.f32 %v456_v36, 0.0 }
  0xf5   : > { %v461_v39 = vpop.f32.mrb[6].mxu0  ;;  %800 = vmatprep.subr.bf16.mxu1 %v799_v35  ;;  %v471_v45 = vmax.f32 %v458_v38, 0.0 }
  0xf6   : > { %v462_v40 = vadd.f32 %v461_v39, %v355_v37  ;;  %v463_v41 = vpop.f32.mrb[7].mxu0  ;;  %802 = vmatpush1.bf16.msra.mxu1 %v801_v34 }
  0xf7   : > { %v464_v42 = vadd.f32 %v463_v41, %v355_v37 }
  0xf8   : > { %v472_v44 = vmax.f32 %v462_v40, 0.0 }
  0xf9   : > { %v473_v46 = vmax.f32 %v464_v42, 0.0 }
  0xfa   : > { %v805_v47 = vpack.c.bf16 %v472_v44, %v470_v43 }
  0xfb   : > { %v803_v48 = vpack.c.bf16 %v473_v46, %v471_v45 }
  0xfd   : > { %804 = vmatprep.subr.bf16.mxu1 %v803_v48 }
  0xfe   : > { %806 = vmatpush1.bf16.msra.mxu1 %v805_v47 }
 0x101   : > { %790 = vmatmul.mubr.msk.f32.vlgmr.msra.gmra.mrb[0].mxu1 %vm494_vm2, %v322_v49 }
 0x102   : > { %577 = vmatprep.mubr.f32.mxu1 %v868_v0 }
 0x105   : > { %791 = vmatmul.mubr.msk.f32.gmra.mrb[2].mxu1 %vm494_vm2, %v323_v50 }
 0x106   : > { %583 = vmatprep.mubr.f32.mxu1 %v868_v0 }
 0x109   : > { %792 = vmatmul.mubr.msk.f32.gmra.mrb[4].mxu1 %vm494_vm2, %v324_v51 }
 0x10a   : > { %589 = vmatprep.mubr.f32.mxu1 %v868_v0 }
 0x10d   : > { %793 = vmatmul.mubr.msk.f32.gmra.mrb[6].mxu1 %vm494_vm2, %v325_v52 }
 0x1d4   : > { %v573_v53 = vpop.f32.mrb[0].mxu1 }
 0x1d5   : > { %v575_v54 = vpop.f32.mrb[1].mxu1  ;;  %v574_v56 = vadd.f32 %v573_v53, %v477_v55 }
 0x1d6   : > { %v576_v58 = vadd.f32 %v575_v54, %v477_v55 }
 0x1d7   : > { %v596_v63 = vmax.f32 %v574_v56, 0.0 }
 0x1d8   : > { %v579_v59 = vpop.f32.mrb[2].mxu1  ;;  %v597_v2 = vmax.f32 %v576_v58, 0.0 }
 0x1d9   : > { %v580_v60 = vadd.f32 %v579_v59, %v482_v57  ;;  %v581_v61 = vpop.f32.mrb[3].mxu1 }
 0x1da   : > { %v582_v62 = vadd.f32 %v581_v61, %v482_v57 }
 0x1db   : > { %v598_v1 = vmax.f32 %v580_v60, 0.0 }
 0x1dc   : > { %v599_v0 = vmax.f32 %v582_v62, 0.0  ;;  %v585_v3 = vpop.f32.mrb[4].mxu1 }
 0x1dd   : > { %v809_v4 = vpack.c.bf16 %v598_v1, %v596_v63  ;;  %v587_v5 = vpop.f32.mrb[5].mxu1  ;;  %v586_v8 = vadd.f32 %v585_v3, %v487_v6 }
 0x1de   : > { %v807_v7 = vpack.c.bf16 %v599_v0, %v597_v2  ;;  %v588_v10 = vadd.f32 %v587_v5, %v487_v6 }
 0x1df   : > { %v600_v15 = vmax.f32 %v586_v8, 0.0 }
 0x1e0   : > { %v591_v11 = vpop.f32.mrb[6].mxu1  ;;  %808 = vmatprep.subr.bf16.mxu0 %v807_v7  ;;  %v601_v17 = vmax.f32 %v588_v10, 0.0 }
 0x1e1   : > { %v592_v12 = vadd.f32 %v591_v11, %v492_v9  ;;  %v593_v13 = vpop.f32.mrb[7].mxu1  ;;  %810 = vmatpush1.bf16.msra.mxu0 %v809_v4 }
 0x1e2   : > { %v594_v14 = vadd.f32 %v593_v13, %v492_v9 }
 0x1e3   : > { %v602_v16 = vmax.f32 %v592_v12, 0.0 }
 0x1e4   : > { %v603_v18 = vmax.f32 %v594_v14, 0.0 }
 0x1e5   : > { %v813_v19 = vpack.c.bf16 %v602_v16, %v600_v15 }
 0x1e6   : > { %v811_v20 = vpack.c.bf16 %v603_v18, %v601_v17 }
 0x1e8   : > { %812 = vmatprep.subr.bf16.mxu0 %v811_v20 }
 0x1e9   : > { %814 = vmatpush1.bf16.msra.mxu0 %v813_v19 }
 0x1ec   : > { %794 = vmatmul.mubr.msk.f32.vlgmr.msra.gmra.mrb[8].mxu0 %vm494_vm2, %v326_v21 }
 0x2bf   : > { %v678_v23 = vpop.f32.mrb[8].mxu0 }
 0x2c0   : > { %v679_v24 = vadd.f32 %v678_v23, %v607_v22  ;;  %v680_v25 = vpop.f32.mrb[9].mxu0 }
 0x2c1   : > { %v681_v26 = vadd.f32 %v680_v25, %v607_v22 }
 0x2c3   : > { %v685_v27 = vcombine.low %v679_v24, %v681_v26 }
 0x2c5   : > { %687 = vst [vmem:[%s316_s11] sm:$0x77] %v685_v27 }
 0x2c6 PF: > { %s17_s26 = sadd.s32 1, %s866_s26   ;;  %s1030_s24 = smov %s862_s25 }
 0x2c7   : > { %p14_p5 = scmp.ge.s32.totalorder %s17_s26, 4   ;;  %s1031_s25 = smov %s1033_s27 }
 0x2c9   :  { %16 = sbr.rel (!%p14_p5) target bundleno = 2 (0x2), region = 78 }

</bundles_post_ra>
